<compile_context>
chip_gen: v7x
topology: tpu7x:2x2x1
jax: 0.10.0
libtpu: 0.0.40
codegen_flags: <defaults>
</compile_context>

<pallas_src>
import math
import functools

import jax
import jax.numpy as jnp
from jax import lax
from jax.experimental import pallas as pl
from jax.experimental.pallas import tpu as pltpu

_VMEM_LIMIT_BYTES = 48 * 1024 * 1024   # safe on v5e/v6e (128 MiB) and v7x (64 MiB)
_MASK_VALUE = -1e30                    # finite "-inf" so online softmax never NaNs


def _pick_block(n, candidates):
    """Largest candidate that evenly divides n, else n itself (full-dim exemption)."""
    for c in candidates:
        if n >= c and n % c == 0:
            return c
    return n


# ---------------------------------------------------------------------------
# Stage 1: fused QKV projection  (B*T, C) @ (C, 3C) + b
# ---------------------------------------------------------------------------
def _qkv_proj_kernel(x_ref, w_ref, b_ref, o_ref):
    # Native-dtype operands on the MXU, f32 accumulation.
    acc = jnp.dot(x_ref[...], w_ref[...], preferred_element_type=jnp.float32)
    o_ref[...] = (acc + b_ref[...].astype(jnp.float32)).astype(o_ref.dtype)


def _qkv_projection(x2d, w_qkv, b_qkv2):
    M, C = x2d.shape
    N = w_qkv.shape[1]
    rb = _pick_block(M, (512, 256, 128))
    cb = _pick_block(N, (512, 384, 256, 128))
    return pl.pallas_call(
        _qkv_proj_kernel,
        out_shape=jax.ShapeDtypeStruct((M, N), x2d.dtype),
        grid_spec=pltpu.PrefetchScalarGridSpec(
            num_scalar_prefetch=0,
            grid=(M // rb, N // cb),
            in_specs=[
                pl.BlockSpec((rb, C), lambda i, j: (i, 0)),    # x rows
                pl.BlockSpec((C, cb), lambda i, j: (0, j)),    # w_qkv column panel
                pl.BlockSpec((1, cb), lambda i, j: (0, j)),    # bias panel
            ],
            out_specs=pl.BlockSpec((rb, cb), lambda i, j: (i, j)),
        ),
        compiler_params=pltpu.CompilerParams(
            dimension_semantics=("parallel", "parallel"),
            vmem_limit_bytes=_VMEM_LIMIT_BYTES),
    )(x2d, w_qkv, b_qkv2)


# ---------------------------------------------------------------------------
# Stage 3: flash attention (online softmax over KV blocks) + output projection
# ---------------------------------------------------------------------------
def _flash_attn_proj_kernel(q_ref, k_ref, v_ref, wp_ref, bp_ref, o_ref,
                            m_sc, l_sc, acc_sc, *, tq, tk, num_heads, head_dim):
    qi = pl.program_id(1)
    ki = pl.program_id(2)
    H, D = num_heads, head_dim
    scale = 1.0 / math.sqrt(D)

    # Last KV block containing any un-masked key for this query block.
    last_ki = ((qi + 1) * tq - 1) // tk

    @pl.when(ki == 0)
    def _init():
        m_sc[...] = jnp.full_like(m_sc, -jnp.inf)
        l_sc[...] = jnp.zeros_like(l_sc)
        acc_sc[...] = jnp.zeros_like(acc_sc)

    # Skip KV blocks that lie entirely above the causal diagonal (~2x compute saved).
    @pl.when(ki <= last_ki)
    def _compute():
        q = q_ref[0]                              # (H, TQ, D), native dtype
        k = k_ref[0]                              # (H, TK, D)
        v = v_ref[0]                              # (H, TK, D)

        # All heads in one batched MXU call, f32 accumulation.
        s = jnp.einsum("htd,hsd->hts", q, k,
                       preferred_element_type=jnp.float32) * scale   # (H,TQ,TK)

        row = qi * tq + lax.broadcasted_iota(jnp.int32, (tq, tk), 0)
        col = ki * tk + lax.broadcasted_iota(jnp.int32, (tq, tk), 1)
        s = jnp.where((row >= col)[None], s, _MASK_VALUE)

        m_prev = m_sc[...]
        m_next = jnp.maximum(m_prev, s.max(axis=-1, keepdims=True))
        alpha = jnp.exp(m_prev - m_next)
        p = jnp.exp(s - m_next)                                        # f32
        l_sc[...] = alpha * l_sc[...] + p.sum(axis=-1, keepdims=True)
        acc_sc[...] = alpha * acc_sc[...] + jnp.einsum(
            "hts,hsd->htd", p.astype(v.dtype), v,
            preferred_element_type=jnp.float32)
        m_sc[...] = m_next

    # Finalize on the diagonal block: normalize, fuse output projection,
    # write one lane-dense (TQ, C) slab.
    @pl.when(ki == last_ki)
    def _finalize():
        inv_l = pl.reciprocal(l_sc[...], approx=True)      # EUP, off the VALU
        y = acc_sc[...] * inv_l                            # (H, TQ, D) f32
        wp = wp_ref[...]                                   # (C, C) native dtype
        C_out = wp.shape[1]
        out = jnp.zeros((tq, C_out), jnp.float32)
        # Per-head accumulation kills the concatenate: sum_h y_h @ W[h*D:(h+1)*D, :]
        for h in range(H):
            out = out + jnp.dot(y[h].astype(wp.dtype), wp[h * D:(h + 1) * D, :],
                                preferred_element_type=jnp.float32)
        out = out + bp_ref[...].astype(jnp.float32)
        o_ref[0] = out.astype(o_ref.dtype)


def _flash_attention_proj(q, k, v, w_proj, b_proj2):
    B, H, T, D = q.shape
    C = H * D
    tb = _pick_block(T, (256, 128))       # same block for q and kv (keeps rows valid)
    n_seq = T // tb

    kernel = functools.partial(_flash_attn_proj_kernel,
                               tq=tb, tk=tb, num_heads=H, head_dim=D)

    def kv_index(b, qi, ki):
        # Clamp to the diagonal block so fully-masked (skipped) steps re-use the
        # already-fetched tile instead of issuing a useless DMA.
        return (b, 0, jnp.minimum(ki, qi), 0)

    return pl.pallas_call(
        kernel,
        out_shape=jax.ShapeDtypeStruct((B, T, C), q.dtype),
        grid_spec=pltpu.PrefetchScalarGridSpec(
            num_scalar_prefetch=0,
            grid=(B, n_seq, n_seq),
            in_specs=[
                pl.BlockSpec((1, H, tb, D), lambda b, qi, ki: (b, 0, qi, 0)),  # q
                pl.BlockSpec((1, H, tb, D), kv_index),                          # k
                pl.BlockSpec((1, H, tb, D), kv_index),                          # v
                pl.BlockSpec((C, C), lambda b, qi, ki: (0, 0)),                 # w_proj
                pl.BlockSpec((1, C), lambda b, qi, ki: (0, 0)),                 # b_proj
            ],
            out_specs=pl.BlockSpec((1, tb, C), lambda b, qi, ki: (b, qi, 0)),
            scratch_shapes=[
                pltpu.VMEM((H, tb, 1), jnp.float32),   # running max  m
                pltpu.VMEM((H, tb, 1), jnp.float32),   # running sum  l
                pltpu.VMEM((H, tb, D), jnp.float32),   # un-normalized output
            ],
        ),
        compiler_params=pltpu.CompilerParams(
            dimension_semantics=("parallel", "parallel", "arbitrary"),
            vmem_limit_bytes=_VMEM_LIMIT_BYTES),
    )(q, k, v, w_proj, b_proj2)


# ---------------------------------------------------------------------------
# Public wrapper mirroring CasualSelfAttention.forward
# ---------------------------------------------------------------------------
def causal_self_attention(x, w_qkv, b_qkv, w_proj, b_proj, *, num_heads):
    """x: (B, T, C); w_qkv: (C, 3C); b_qkv: (3C,); w_proj: (C, C); b_proj: (C,)."""
    B, T, C = x.shape
    assert C % num_heads == 0
    H = num_heads
    D = C // H

    # Stage 1: fused QKV projection over the flattened token slab.
    qkv = _qkv_projection(x.reshape(B * T, C), w_qkv, b_qkv.reshape(1, 3 * C))

    # Stage 2: layout plumbing (XLA) -> head-major (B, H, T, D).
    q, k, v = jnp.split(qkv, 3, axis=-1)

    def heads(a):
        return jnp.transpose(a.reshape(B, T, H, D), (0, 2, 1, 3))

    q, k, v = heads(q), heads(k), heads(v)

    # Stage 3: flash attention + fused output projection -> (B, T, C).
    return _flash_attention_proj(q, k, v, w_proj, b_proj.reshape(1, C))


def _reference(x, w_qkv, b_qkv, w_proj, b_proj, num_heads):
    """Pure-JAX reference mirroring the PyTorch forward pass."""
    B, T, C = x.shape
    H, D = num_heads, C // num_heads
    qkv = x @ w_qkv + b_qkv
    q, k, v = jnp.split(qkv, 3, axis=2)
    q = q.reshape(B, T, H, D).transpose(0, 2, 1, 3)
    k = k.reshape(B, T, H, D).transpose(0, 2, 1, 3)
    v = v.reshape(B, T, H, D).transpose(0, 2, 1, 3)
    att = (q @ jnp.swapaxes(k, -2, -1)) / math.sqrt(D)
    mask = jnp.tril(jnp.ones((T, T), dtype=bool))
    att = jnp.where(mask[None, None], att, -jnp.inf)
    att = jax.nn.softmax(att, axis=-1)
    y = att @ v
    y = y.transpose(0, 2, 1, 3).reshape(B, T, C)
    return y @ w_proj + b_proj


if __name__ == "__main__":
    # Small shapes consistent with the module: batch=2, seq=8, embed=32, heads=4.
    B, T, C, H = 2, 8, 32, 4

    key = jax.random.PRNGKey(0)
    kx, k1, k2, k3, k4 = jax.random.split(key, 5)

    x = jax.random.normal(kx, (B, T, C), dtype=jnp.float32)

    # Deterministic nn.Linear-style init: uniform(-1/sqrt(in), 1/sqrt(in)).
    bound = 1.0 / math.sqrt(C)
    w_qkv = jax.random.uniform(k1, (C, 3 * C), jnp.float32, -bound, bound)
    b_qkv = jax.random.uniform(k2, (3 * C,), jnp.float32, -bound, bound)
    w_proj = jax.random.uniform(k3, (C, C), jnp.float32, -bound, bound)
    b_proj = jax.random.uniform(k4, (C,), jnp.float32, -bound, bound)

    out = causal_self_attention(x, w_qkv, b_qkv, w_proj, b_proj, num_heads=H)
    out = jax.block_until_ready(out)

    ref = _reference(x, w_qkv, b_qkv, w_proj, b_proj, H)
    assert out.shape == (B, T, C)
    # Tolerance accounts for pl.reciprocal(approx=True) in the softmax normalizer.
    assert jnp.allclose(out, ref, atol=1e-2, rtol=1e-2), "mismatch vs reference"

    print("KERNEL_OK")
</pallas_src>

<mosaic_0001>
module attributes {stable_mosaic.version = 11 : i64} {
  func.func @_qkv_proj_kernel(%arg0: i32, %arg1: i32, %arg2: memref<16x32xf32, #tpu.memory_space<vmem>>, %arg3: memref<32x96xf32, #tpu.memory_space<vmem>>, %arg4: memref<1x96xf32, #tpu.memory_space<vmem>>, %arg5: memref<16x96xf32, #tpu.memory_space<vmem>>) attributes {dimension_semantics = [#tpu.dimension_semantics<parallel>, #tpu.dimension_semantics<parallel>], iteration_bounds = array<i64: 1, 1>, scalar_prefetch = 0 : i64, scratch_operands = 0 : i64, tpu.core_type = #tpu.core_type<tc>, window_params = [{transform_indices = @transform_0, window_bounds = array<i64: 16, 32>}, {transform_indices = @transform_1, window_bounds = array<i64: 32, 96>}, {transform_indices = @transform_2, window_bounds = array<i64: 1, 96>}, {transform_indices = @transform_3, window_bounds = array<i64: 16, 96>}]} {
    %c0 = arith.constant 0 : index
    %c0_0 = arith.constant 0 : index
    %0 = vector.load %arg2[%c0, %c0_0] : memref<16x32xf32, #tpu.memory_space<vmem>>, vector<16x32xf32>
    %c0_1 = arith.constant 0 : index
    %c0_2 = arith.constant 0 : index
    %1 = vector.load %arg3[%c0_1, %c0_2] : memref<32x96xf32, #tpu.memory_space<vmem>>, vector<32x96xf32>
    %cst = arith.constant dense<0.000000e+00> : vector<16x96xf32>
    %2 = tpu.matmul %0, %1, %cst {dimension_numbers = #tpu.dot_dimension_numbers<[1], [0], [0], [1], [0, 0, 1, 1], [], []>} : vector<16x32xf32>, vector<32x96xf32>, vector<16x96xf32> -> vector<16x96xf32>
    %c0_3 = arith.constant 0 : index
    %c0_4 = arith.constant 0 : index
    %3 = vector.load %arg4[%c0_3, %c0_4] : memref<1x96xf32, #tpu.memory_space<vmem>>, vector<1x96xf32>
    %4 = vector.broadcast %3 : vector<1x96xf32> to vector<16x96xf32>
    %5 = arith.addf %2, %4 : vector<16x96xf32>
    %c0_5 = arith.constant 0 : index
    %c0_6 = arith.constant 0 : index
    %6 = vector.load %arg5[%c0_5, %c0_6] : memref<16x96xf32, #tpu.memory_space<vmem>>, vector<16x96xf32>
    tpu.vector_store %arg5[%c0_5, %c0_6], %5 {strides = array<i32>} : memref<16x96xf32, #tpu.memory_space<vmem>>, vector<16x96xf32>,
    return
  }
  func.func @transform_0(%arg0: i32, %arg1: i32) -> (i32, i32) {
    %c0_i32 = arith.constant 0 : i32
    %c0_i32_0 = arith.constant 0 : i32
    return %arg0, %c0_i32 : i32, i32
  }
  func.func @transform_1(%arg0: i32, %arg1: i32) -> (i32, i32) {
    %c0_i32 = arith.constant 0 : i32
    %c0_i32_0 = arith.constant 0 : i32
    return %c0_i32, %arg1 : i32, i32
  }
  func.func @transform_2(%arg0: i32, %arg1: i32) -> (i32, i32) {
    %c0_i32 = arith.constant 0 : i32
    %c0_i32_0 = arith.constant 0 : i32
    return %c0_i32, %arg1 : i32, i32
  }
  func.func @transform_3(%arg0: i32, %arg1: i32) -> (i32, i32) {
    %c0_i32 = arith.constant 0 : i32
    return %arg0, %arg1 : i32, i32
  }
}

</mosaic_0001>

<bundles_post_ra>
// kernel: tpu_custom_call.1
= control target key start
LH: loop header
LB: loop body
LE: loop exit
PB: predicated region body
PF: predicated region fallthrough
CT: control target
= control target key end

     0   :  { %8 = vsyncpa [#allocation3], 0  ;;  %s337_s0 = inlined_call_operand.hbm [shape: f32[16,32], index: 0, kind: input, shape index: {}]   ;;  %s338_s1 = inlined_call_operand.hbm [shape: f32[32,96], index: 1, kind: input, shape index: {}]   ;;  %s339_s2 = inlined_call_operand.vmem [shape: f32[1,96], index: 2, kind: input, shape index: {}]   ;;  %s340_s3 = inlined_call_operand.hbm [shape: f32[16,96], index: 3, kind: output, shape index: {}]  }
   0x1   :  { %9 = vsyncpa [#allocation6], 0 }
   0x2   :  { %10 = vsyncpa [#allocation4], 0  ;;  %s264_s12 = smov [#allocation2]   ;;  %s192_s16 = scalar_lea.hbm %s337_s0, 256 }
   0x3   :  { %s16_s13 = sshll.u32 %s264_s12, 4  ;;  %p193_p0 = scmp.ne.s32.totalorder %s337_s0, %s192_s16  ;;  %s17_s13 = int_to_ptr.vmem [resolvable:$true] %s16_s13 }
   0x4   :  { %p196_p1 = scmp.lt.u32.totalorder %s192_s16, %s337_s0 }
   0x6   :  { %p198_p2 = pnand %p196_p1, %p193_p0 }
   0x8   :  { %201 = shalt.err (!%p198_p2)
}
   0x9   :  { %s202_s21 = scalar_lea.vmem %s17_s13, 256  ;;  %p207_p4 = scmp.lt.s32.totalorder %s17_s13, %s17_s13 }
   0xa   :  { %p203_p3 = scmp.ne.s32.totalorder %s17_s13, %s202_s21  ;;  %p208_p5 = scmp.lt.s32.totalorder %s202_s21, %s202_s21 }
   0xc   :  { %p209_p6 = por %p208_p5, %p207_p4 }
   0xe   :  { %p210_p7 = pnand %p209_p6, %p203_p3 }
  0x10   :  { %213 = shalt.err (!%p210_p7)
}
  0x11   :  { %s265_s22 = smov 128   ;;  %s266_s23 = smov 8  }
  0x12   :  { %22 = dma.hbm_to_vmem [thread:$0]  %s337_s0, 256, %s17_s13, [#allocation3], %s265_s22, %s265_s22, %s266_s23  }
  0x13   :  { %s267_s26 = smov [#allocation5]   ;;  %s214_s30 = scalar_lea.hbm %s338_s1, 512 }
  0x14   :  { %s28_s27 = sshll.u32 %s267_s26, 4  ;;  %p215_p8 = scmp.ne.s32.totalorder %s338_s1, %s214_s30  ;;  %s29_s27 = int_to_ptr.vmem [resolvable:$true] %s28_s27 }
  0x15   :  { %p218_p9 = scmp.lt.u32.totalorder %s214_s30, %s338_s1 }
  0x17   :  { %p220_p10 = pnand %p218_p9, %p215_p8 }
  0x19   :  { %223 = shalt.err (!%p220_p10)
}
  0x1a   :  { %s224_s8 = scalar_lea.vmem %s29_s27, 512  ;;  %p229_p12 = scmp.lt.s32.totalorder %s29_s27, %s29_s27 }
  0x1b   :  { %p225_p11 = scmp.ne.s32.totalorder %s29_s27, %s224_s8  ;;  %p230_p13 = scmp.lt.s32.totalorder %s224_s8, %s224_s8 }
  0x1d   :  { %p231_p0 = por %p230_p13, %p229_p12 }
  0x1f   :  { %p232_p1 = pnand %p231_p0, %p225_p11 }
  0x21   :  { %235 = shalt.err (!%p232_p1)
}
  0x22   :  { %34 = dma.hbm_to_vmem [thread:$0]  %s338_s1, 512, %s29_s27, [#allocation6], %s265_s22, %s265_s22, %s266_s23  }
  0x23   :  { %258 = dma.done.wait [#allocation3], 256  }
  0x24   :  { %259 = vsyncadd [#allocation3], 4294967040 }
  0x25   :  { %260 = dma.done.wait [#allocation6], 512  }
  0x26   :  { %261 = vsyncadd [#allocation6], 4294966784  ;;  %vm56_vm0 = vcmask 261120   ;;  %v45_v0 = vld [vmem:[#allocation5] sm:$0xff]  ;;  %v46_v1 = vld [vmem:[#allocation5 + $0x8] sm:$0xff]  ;;  %s268_s11 = smov [#allocation7]  }
  0x27   :  { %v47_v2 = vld [vmem:[#allocation5 + $0x10] sm:$0xff]  ;;  %v179_v3 = vpack.c.bf16 %v46_v1, %v45_v0  ;;  %v48_v4 = vld [vmem:[#allocation5 + $0x18] sm:$0xff]  ;;  %s146_s12 = sshll.u32 %s268_s11, 4  ;;  %vm138_vm1 = vcmask 785408   ;;  %s147_s12 = int_to_ptr.vmem [resolvable:$true] %s146_s12 }
  0x28   :  { %v43_v5 = vld [vmem:[#allocation2] sm:$0xff]  ;;  %v183_v6 = vpack.c.bf16 %v48_v4, %v47_v2  ;;  %v44_v7 = vld [vmem:[#allocation2 + $0x8] sm:$0xff]  ;;  %s236_s13 = scalar_lea.vmem %s147_s12, 256  ;;  %p241_p3 = scmp.lt.s32.totalorder %s147_s12, %s147_s12 }
  0x29   :  { %176 = vmatprep.mubr.msk.f32.mxu0 %vm56_vm0, %v43_v5  ;;  %180 = vmatprep.subr.bf16.mxu0 %v179_v3  ;;  %v159_v8 = vld [vmem:[%s339_s2] ss:$0 sm:$0xff]  ;;  %p237_p2 = scmp.ne.s32.totalorder %s147_s12, %s236_s13  ;;  %p242_p4 = scmp.lt.s32.totalorder %s236_s13, %s236_s13 }
  0x2a   :  { %182 = vmatpush3.bf16.msra.mxu0 %v179_v3 }
  0x2b   :  { %184 = vmatprep.subr.bf16.mxu0 %v183_v6  ;;  %p243_p5 = por %p242_p4, %p241_p3 }
  0x2d   :  { %p244_p6 = pnand %p243_p5, %p237_p2 }
  0x2e   :  { %186 = vmatpush3.bf16.msra.mxu0 %v183_v6 }
  0x31   :  { %177 = vmatmul.mubr.msk.f32.vlgmr.msra.gmra.mrb[0].mxu0 %vm56_vm0, %v44_v7 }
 0x104   :  { %v178_v9 = vpop.f32.mrb[0].mxu0 }
 0x105   :  { %v135_v10 = vadd.f32 %v178_v9, %v159_v8  ;;  %v129_v11 = vpop.f32.mrb[1].mxu0 }
 0x106   :  { %v130_v12 = vadd.f32 %v159_v8, %v129_v11 }
 0x107   :  { %140 = vst.msk [vmem:[#allocation7 + $0x8] sm:$0xff] %vm138_vm1, %v135_v10 }
 0x108   :  { %139 = vst.msk [vmem:[#allocation7] sm:$0xff] %vm138_vm1, %v130_v12 }
 0x109   :  { %247 = shalt.err (!%p244_p6)
}
 0x10a   :  { %s248_s2 = scalar_lea.hbm %s340_s3, 256 }
 0x10b   :  { %p249_p7 = scmp.ne.s32.totalorder %s340_s3, %s248_s2  ;;  %p252_p8 = scmp.lt.u32.totalorder %s248_s2, %s340_s3 }
 0x10d   :  { %p254_p9 = pnand %p252_p8, %p249_p7 }
 0x10f   :  { %257 = shalt.err (!%p254_p9)
}
 0x110   :  { %152 = dma.vmem_to_hbm [thread:$0]  %s147_s12, 256, %s340_s3, [#allocation4], %s265_s22, %s265_s22, %s266_s23  }
 0x111   :  { %262 = dma.done.wait [#allocation4], 256  }
 0x112   :  { %263 = vsyncadd [#allocation4], 4294967040 }
 0x113   :  { %156 = vsyncpa [#allocation3], 1 }
 0x114   :  { %157 = vsyncpa [#allocation6], 1 }
 0x115   :  { %158 = vsyncpa [#allocation4], 1 }

</bundles_post_ra>
